<compile_context>
chip_gen: v7x
topology: tpu7x:2x2x1
jax: 0.10.0
libtpu: 0.0.40
codegen_flags: <defaults>
</compile_context>

<pallas_src>
import functools
import math

import jax
import jax.numpy as jnp
import numpy as np
from jax.experimental import pallas as pl
from jax.experimental.pallas import tpu as pltpu

_LANE = 128     # lane width: hidden feature dims are padded to multiples of this
_SUBLANE = 8    # f32 sublane width: batch tile must be a multiple of this


def _round_up(x, m):
    return (x + m - 1) // m * m


def _apply_output_activation(h, name):
    """Subset of threestudio's get_activation(); None/'none' == identity."""
    if name is None or name == "none":
        return h
    if name == "relu":
        return jnp.maximum(h, 0.0)
    if name == "sigmoid":
        return jax.nn.sigmoid(h)
    if name == "tanh":
        return jnp.tanh(h)
    if name == "exp":
        return jnp.exp(h)
    if name == "softplus":
        return jax.nn.softplus(h)
    # TODO(synk): threestudio's get_activation supports a few more exotic
    # activations (trunc_exp, scale_-N, ...); add here if a config needs them.
    raise ValueError(f"unsupported output_activation: {name!r}")


def _make_mlp_kernel(n_layers, output_activation):
    """Fused MLP kernel body for a fixed (static) layer count."""

    def kernel(x_ref, *refs):
        w_refs = refs[:n_layers]
        out_ref = refs[n_layers]

        h = x_ref[...]                                    # (block_n, dim_in) f32
        for li in range(n_layers):
            # MXU matmul with f32 accumulate (matches torch f32 forward).
            h = jnp.dot(h, w_refs[li][...], preferred_element_type=jnp.float32)
            if li < n_layers - 1:
                h = jnp.maximum(h, 0.0)                   # ReLU on the VPU
        out_ref[...] = _apply_output_activation(h, output_activation).astype(out_ref.dtype)

    return kernel


def _choose_block_n(n_rows, target=2048):
    """Large batch tile to amortize per-step overhead, but always >= 2 grid
    blocks (so both v7x TensorCores get work) when there are enough rows."""
    n_rows = max(int(n_rows), 1)
    if n_rows <= 2 * _SUBLANE:
        return _round_up(n_rows, _SUBLANE)
    half = _round_up(-(-n_rows // 2), _SUBLANE)
    return max(_SUBLANE, min(target, half))


@functools.partial(jax.jit, static_argnames=("output_activation", "block_n"))
def _vanilla_mlp_forward(x, padded_weights, output_activation, block_n):
    """x: (N, dim_in) f32, unpadded.  padded_weights: tuple of kernel-ready
    (K_i, M_i) f32 matrices (hidden dims padded to lane multiples)."""
    N, dim_in = x.shape
    n_layers = len(padded_weights)
    dim_out = padded_weights[-1].shape[1]

    # Pad only the batch dim (rows) so the grid tiles evenly.
    Np = _round_up(max(N, 1), block_n)
    xp = x if Np == N else jnp.pad(x, ((0, Np - N), (0, 0)))

    kernel = _make_mlp_kernel(n_layers, output_activation)

    # Input: batch-tiled; last dim == full array dim (legal even when < 128).
    in_specs = [pl.BlockSpec((block_n, dim_in), lambda g: (g, 0))]
    for w in padded_weights:
        # Constant index_map -> the (small) weight stays resident in VMEM.
        # (Single-buffering via pipeline_mode would shave a few hundred KiB of
        #  VMEM but is skipped here to keep the pallas_call path maximally
        #  portable across JAX versions.)
        in_specs.append(pl.BlockSpec(w.shape, lambda g: (0, 0)))

    out = pl.pallas_call(
        kernel,
        out_shape=jax.ShapeDtypeStruct((Np, dim_out), jnp.float32),
        grid=(Np // block_n,),
        in_specs=in_specs,
        # True dim_out (no lane padding written back to HBM).
        out_specs=pl.BlockSpec((block_n, dim_out), lambda g: (g, 0)),
        compiler_params=pltpu.CompilerParams(
            dimension_semantics=("parallel",),
            # Generous but safe on every generation (v7x physical VMEM = 64 MiB);
            # per-step footprint at block_n=2048 is only a few MiB.
            vmem_limit_bytes=32 * 1024 * 1024,
        ),
    )(xp, *padded_weights)

    return out[:N]


class VanillaMLP:
    """JAX/Pallas port of threestudio's VanillaMLP (bias-free Linear + ReLU stack)."""

    def __init__(self, dim_in, dim_out, config, key=None):
        if key is None:
            key = jax.random.PRNGKey(42)
        self.dim_in = dim_in
        self.dim_out = dim_out
        self.n_neurons = config["n_neurons"]
        self.n_hidden_layers = config["n_hidden_layers"]
        self.output_activation = config.get("output_activation", None)

        # Layer dims: dim_in -> n_neurons (x n_hidden_layers) -> dim_out
        dims = [dim_in] + [self.n_neurons] * self.n_hidden_layers + [dim_out]
        # Only hidden widths are padded to lane multiples; input/output widths
        # are left untouched so HBM reads/writes carry no padding.
        pdims = [dim_in] + [_round_up(d, _LANE) for d in dims[1:-1]] + [dim_out]

        self.weights = []          # unpadded, (in, out) layout == x @ W_torch.T
        padded = []
        for i in range(len(dims) - 1):
            key, sub = jax.random.split(key)
            bound = 1.0 / math.sqrt(dims[i])  # ~ torch nn.Linear default init bound
            w = jax.random.uniform(sub, (dims[i], dims[i + 1]), jnp.float32,
                                   minval=-bound, maxval=bound)
            self.weights.append(w)
            wp = jnp.zeros((pdims[i], pdims[i + 1]), jnp.float32)
            wp = wp.at[: dims[i], : dims[i + 1]].set(w)
            padded.append(wp)
        # Kernel-ready weights, materialized exactly once.
        self.padded_weights = tuple(jax.device_put(w) for w in padded)

    def forward(self, x):
        lead = x.shape[:-1]
        x2 = x.reshape(-1, x.shape[-1]).astype(jnp.float32)
        block_n = _choose_block_n(x2.shape[0])
        out = _vanilla_mlp_forward(
            x2, self.padded_weights,
            output_activation=self.output_activation, block_n=block_n)
        return out.reshape(*lead, out.shape[-1])

    __call__ = forward


def ref_mlp(x, weights, output_activation):
    """Pure-JAX reference with identical semantics (for verification)."""
    h = x.astype(jnp.float32)
    for i, w in enumerate(weights):
        h = h @ w
        if i < len(weights) - 1:
            h = jnp.maximum(h, 0.0)
    return _apply_output_activation(h, output_activation)


if __name__ == "__main__":
    config = dict(n_neurons=32, n_hidden_layers=2, output_activation=None)
    dim_in, dim_out = 16, 4

    mlp = VanillaMLP(dim_in, dim_out, config)

    key = jax.random.PRNGKey(0)
    # 500 points (not a multiple of the batch tile) exercises the row-padding
    # path; pads to 512 rows -> grid of 2 blocks (both v7x TensorCores busy).
    x = jax.random.normal(key, (500, dim_in), dtype=jnp.float32)

    out = mlp.forward(x)
    out = jax.block_until_ready(out)
    assert out.shape == (500, dim_out)

    ref = ref_mlp(x, mlp.weights, config["output_activation"])
    np.testing.assert_allclose(np.asarray(out), np.asarray(ref),
                               rtol=2e-5, atol=1e-5)

    print("KERNEL_OK")
</pallas_src>

<mosaic_0001>
module attributes {stable_mosaic.version = 11 : i64} {
  func.func @kernel(%arg0: i32, %arg1: memref<256x16xf32, #tpu.memory_space<vmem>>, %arg2: memref<16x128xf32, #tpu.memory_space<vmem>>, %arg3: memref<128x128xf32, #tpu.memory_space<vmem>>, %arg4: memref<128x4xf32, #tpu.memory_space<vmem>>, %arg5: memref<256x4xf32, #tpu.memory_space<vmem>>) attributes {dimension_semantics = [#tpu.dimension_semantics<parallel>], iteration_bounds = array<i64: 2>, scalar_prefetch = 0 : i64, scratch_operands = 0 : i64, tpu.core_type = #tpu.core_type<tc>, window_params = [{transform_indices = @transform_0, window_bounds = array<i64: 256, 16>}, {pipeline_mode = #tpu.pipeline_mode<synchronous>, transform_indices = @transform_1, window_bounds = array<i64: 16, 128>}, {pipeline_mode = #tpu.pipeline_mode<synchronous>, transform_indices = @transform_2, window_bounds = array<i64: 128, 128>}, {pipeline_mode = #tpu.pipeline_mode<synchronous>, transform_indices = @transform_3, window_bounds = array<i64: 128, 4>}, {transform_indices = @transform_4, window_bounds = array<i64: 256, 4>}]} {
    %c0 = arith.constant 0 : index
    %c0_0 = arith.constant 0 : index
    %0 = vector.load %arg1[%c0, %c0_0] : memref<256x16xf32, #tpu.memory_space<vmem>>, vector<256x16xf32>
    %c0_1 = arith.constant 0 : index
    %c0_2 = arith.constant 0 : index
    %1 = vector.load %arg2[%c0_1, %c0_2] : memref<16x128xf32, #tpu.memory_space<vmem>>, vector<16x128xf32>
    %cst = arith.constant dense<0.000000e+00> : vector<256x128xf32>
    %2 = tpu.matmul %0, %1, %cst {dimension_numbers = #tpu.dot_dimension_numbers<[1], [0], [0], [1], [0, 0, 1, 1], [], []>} : vector<256x16xf32>, vector<16x128xf32>, vector<256x128xf32> -> vector<256x128xf32>
    %cst_3 = arith.constant 0.000000e+00 : f32
    %3 = vector.broadcast %cst_3 : f32 to vector<256x128xf32>
    %4 = arith.maximumf %2, %3 : vector<256x128xf32>
    %c0_4 = arith.constant 0 : index
    %c0_5 = arith.constant 0 : index
    %5 = vector.load %arg3[%c0_4, %c0_5] : memref<128x128xf32, #tpu.memory_space<vmem>>, vector<128x128xf32>
    %cst_6 = arith.constant dense<0.000000e+00> : vector<256x128xf32>
    %6 = tpu.matmul %4, %5, %cst_6 {dimension_numbers = #tpu.dot_dimension_numbers<[1], [0], [0], [1], [0, 0, 1, 1], [], []>} : vector<256x128xf32>, vector<128x128xf32>, vector<256x128xf32> -> vector<256x128xf32>
    %cst_7 = arith.constant 0.000000e+00 : f32
    %7 = vector.broadcast %cst_7 : f32 to vector<256x128xf32>
    %8 = arith.maximumf %6, %7 : vector<256x128xf32>
    %c0_8 = arith.constant 0 : index
    %c0_9 = arith.constant 0 : index
    %9 = vector.load %arg4[%c0_8, %c0_9] : memref<128x4xf32, #tpu.memory_space<vmem>>, vector<128x4xf32>
    %cst_10 = arith.constant dense<0.000000e+00> : vector<256x4xf32>
    %10 = tpu.matmul %8, %9, %cst_10 {dimension_numbers = #tpu.dot_dimension_numbers<[1], [0], [0], [1], [0, 0, 1, 1], [], []>} : vector<256x128xf32>, vector<128x4xf32>, vector<256x4xf32> -> vector<256x4xf32>
    %c0_11 = arith.constant 0 : index
    %c0_12 = arith.constant 0 : index
    %11 = vector.load %arg5[%c0_11, %c0_12] : memref<256x4xf32, #tpu.memory_space<vmem>>, vector<256x4xf32>
    tpu.vector_store %arg5[%c0_11, %c0_12], %10 {strides = array<i32>} : memref<256x4xf32, #tpu.memory_space<vmem>>, vector<256x4xf32>,
    return
  }
  func.func @transform_0(%arg0: i32) -> (i32, i32) {
    %c0_i32 = arith.constant 0 : i32
    %c0_i32_0 = arith.constant 0 : i32
    return %arg0, %c0_i32 : i32, i32
  }
  func.func @transform_1(%arg0: i32) -> (i32, i32) {
    %c0_i32 = arith.constant 0 : i32
    %c0_i32_0 = arith.constant 0 : i32
    %c0_i32_1 = arith.constant 0 : i32
    return %c0_i32, %c0_i32_0 : i32, i32
  }
  func.func @transform_2(%arg0: i32) -> (i32, i32) {
    %c0_i32 = arith.constant 0 : i32
    %c0_i32_0 = arith.constant 0 : i32
    %c0_i32_1 = arith.constant 0 : i32
    return %c0_i32, %c0_i32_0 : i32, i32
  }
  func.func @transform_3(%arg0: i32) -> (i32, i32) {
    %c0_i32 = arith.constant 0 : i32
    %c0_i32_0 = arith.constant 0 : i32
    %c0_i32_1 = arith.constant 0 : i32
    return %c0_i32, %c0_i32_0 : i32, i32
  }
  func.func @transform_4(%arg0: i32) -> (i32, i32) {
    %c0_i32 = arith.constant 0 : i32
    %c0_i32_0 = arith.constant 0 : i32
    return %arg0, %c0_i32 : i32, i32
  }
}

</mosaic_0001>

<bundles_post_ra>
// kernel: _vanilla_mlp_forward.1
= control target key start
LH: loop header
LB: loop body
LE: loop exit
PB: predicated region body
PF: predicated region fallthrough
CT: control target
= control target key end

     0   :  { %s1688_s15 = smov 0   ;;  %s1946_s0 = inlined_call_operand.vmem [shape: f32[512,16], index: 0, kind: input, shape index: {}]   ;;  %s1947_s1 = inlined_call_operand.vmem [shape: f32[16,128], index: 1, kind: input, shape index: {}]   ;;  %s1948_s2 = inlined_call_operand.vmem [shape: f32[128,128], index: 2, kind: input, shape index: {}]   ;;  %s1949_s3 = inlined_call_operand.vmem [shape: f32[128,4], index: 3, kind: input, shape index: {}]   ;;  %s1950_s4 = inlined_call_operand.vmem [shape: f32[512,4], index: 4, kind: output, shape index: {}]  }
   0x1 LB: > { %s1192_s16 = sadd.s32 4294967295, %s1661_s15   ;;  %p1196_p0 = scmp.ge.s32.totalorder %s1661_s15, 1  ;;  %s1661_s15 = sphi %s1688_s15, %s14_s15  }
   0x2   : > { %p163_p1 = scmp.lt.s32.totalorder %s1661_s15, 3 }
   0x4   : > { %p164_p2 = pnand %p1196_p0, %p163_p1 }
   0x5   : > { %v233_v0 = vld [vmem:[%s1947_s1] sm:$0xff] (!%p164_p2)  ;;  %v234_v1 = vld [vmem:[%s1947_s1 + $0x8] sm:$0xff] (!%p164_p2)  ;;  %s1197_s21 = sshll.u32 (!%p164_p2), %s1192_s16, 5  ;;  %vm235_vm0 = vcmask (!%p164_p2), 130048   ;;  %v591_v9 = vld [vmem:[%s1948_s2 + $0x10] sm:$0xff] (!%p164_p2)  ;;  %vm1103_vm1 = vcmask (!%p164_p2), 31744  }
   0x6   : > { %167 = sbr.rel (%p164_p2) target bundleno = 724 (0x2d4), region = 36  ;;  %v589_v2 = vld [vmem:[%s1948_s2] sm:$0xff] (!%p164_p2)  ;;  %v1577_v3 = vpack.c.bf16 (!%p164_p2), %v234_v1, %v233_v0  ;;  %p190_p3 = scmp.lt.s32.totalorder (!%p164_p2), %s1197_s21, 63  ;;  %v590_v4 = vld [vmem:[%s1948_s2 + $0x8] sm:$0xff] (!%p164_p2)  ;;  %v592_v10 = vld [vmem:[%s1948_s2 + $0x18] sm:$0xff] (!%p164_p2) }
   0x7   : > { %v1581_v5 = vpack.c.bf16 (!%p164_p2), %v590_v4, %v589_v2  ;;  %v1585_v15 = vpack.c.bf16 (!%p164_p2), %v592_v10, %v591_v9  ;;  %v593_v17 = vld [vmem:[%s1948_s2 + $0x20] sm:$0xff] (!%p164_p2)  ;;  %v594_v18 = vld [vmem:[%s1948_s2 + $0x28] sm:$0xff] (!%p164_p2)  ;;  %v595_v24 = vld [vmem:[%s1948_s2 + $0x30] sm:$0xff] (!%p164_p2) }
   0x8   : > { %1578 = vmatprep.subr.bf16.mxu0 (!%p164_p2), %v1577_v3  ;;  %1645 = vmatprep.subr.bf16.mxu1 (!%p164_p2), %v1577_v3  ;;  %v1589_v23 = vpack.c.bf16 (!%p164_p2), %v594_v18, %v593_v17  ;;  %v596_v25 = vld [vmem:[%s1948_s2 + $0x38] sm:$0xff] (!%p164_p2)  ;;  %v597_v31 = vld [vmem:[%s1948_s2 + $0x40] sm:$0xff] (!%p164_p2)  ;;  %v598_v32 = vld [vmem:[%s1948_s2 + $0x48] sm:$0xff] (!%p164_p2) }
   0x9   : > { %1580 = vmatpush3.bf16.msra.mxu0 (!%p164_p2), %v1577_v3  ;;  %1646 = vmatpush3.bf16.msra.mxu1 (!%p164_p2), %v1577_v3  ;;  %v1593_v30 = vpack.c.bf16 (!%p164_p2), %v596_v25, %v595_v24  ;;  %v1597_v37 = vpack.c.bf16 (!%p164_p2), %v598_v32, %v597_v31  ;;  %v599_v38 = vld [vmem:[%s1948_s2 + $0x50] sm:$0xff] (!%p164_p2)  ;;  %v600_v39 = vld [vmem:[%s1948_s2 + $0x58] sm:$0xff] (!%p164_p2)  ;;  %v601_v45 = vld [vmem:[%s1948_s2 + $0x60] sm:$0xff] (!%p164_p2) }
   0xa   : > { %1582 = vmatprep.subr.bf16.mxu1 (!%p164_p2), %v1581_v5  ;;  %v1601_v44 = vpack.c.bf16 (!%p164_p2), %v600_v39, %v599_v38  ;;  %v602_v46 = vld [vmem:[%s1948_s2 + $0x68] sm:$0xff] (!%p164_p2)  ;;  %v603_v56 = vld [vmem:[%s1948_s2 + $0x70] sm:$0xff] (!%p164_p2)  ;;  %v604_v57 = vld [vmem:[%s1948_s2 + $0x78] sm:$0xff] (!%p164_p2) }
   0xb   : > { %v1605_v51 = vpack.c.bf16 (!%p164_p2), %v602_v46, %v601_v45  ;;  %v1609_v58 = vpack.c.bf16 (!%p164_p2), %v604_v57, %v603_v56  ;;  %v862_v59 = vld [vmem:[%s1949_s3] sm:$0xff] (!%p164_p2)  ;;  %v863_v60 = vld [vmem:[%s1949_s3 + $0x8] sm:$0xff] (!%p164_p2)  ;;  %v864_v61 = vld [vmem:[%s1949_s3 + $0x10] sm:$0xff] (!%p164_p2) }
   0xc   : > { %v1613_v62 = vpack.c.bf16 (!%p164_p2), %v863_v60, %v862_v59  ;;  %v865_v63 = vld [vmem:[%s1949_s3 + $0x18] sm:$0xff] (!%p164_p2)  ;;  %v866_v1 = vld [vmem:[%s1949_s3 + $0x20] sm:$0xff] (!%p164_p2)  ;;  %v867_v2 = vld [vmem:[%s1949_s3 + $0x28] sm:$0xff] (!%p164_p2) }
   0xd   : > { %s1952_s21 = smov (!%p190_p3, %s1197_s21), 63  ;;  %v1617_v0 = vpack.c.bf16 %v865_v63, %v864_v61  ;;  %v1621_v3 = vpack.c.bf16 %v867_v2, %v866_v1  ;;  %v868_v4 = vld [vmem:[%s1949_s3 + $0x30] sm:$0xff] }
   0xe   : > { %s1198_s26 = sshll.u32 %s1952_s21, 3  ;;  %1614 = vmatprep.subr.bf16.mxu0 %v1613_v62  ;;  %v872_v10 = vld [vmem:[%s1949_s3 + $0x50] sm:$0xff] }
   0xf   : > { %s1716_s29 = scalar_lea.vmem %s1946_s0, %s1198_s26  ;;  %s1877_s22 = scalar_lea.vmem %s1950_s4, %s1198_s26 }
  0x10   : > { %v201_v6 = vld [vmem:[%s1716_s29] sm:$0xff]  ;;  %v202_v7 = vld [vmem:[%s1716_s29 + $0x8] sm:$0xff]  ;;  %v203_v8 = vld [vmem:[%s1716_s29 + $0x10] sm:$0xff] }
  0x11   : > { %1369 = vmatprep.mubr.msk.f32.mxu0 %vm235_vm0, %v201_v6  ;;  %v204_v11 = vld [vmem:[%s1716_s29 + $0x18] sm:$0xff]  ;;  %v205_v12 = vld [vmem:[%s1716_s29 + $0x20] sm:$0xff]  ;;  %v218_v14 = vld [vmem:[%s1716_s29 + $0x88] sm:$0xff] }
  0x12   : > { %1370 = vmatmul.mubr.msk.f32.vlgmr.msra.gmra.mrb[0].mxu0 %vm235_vm0, %v202_v7  ;;  %v217_v13 = vld [vmem:[%s1716_s29 + $0x80] sm:$0xff]  ;;  %v219_v16 = vld [vmem:[%s1716_s29 + $0x90] sm:$0xff]  ;;  %v206_v19 = vld [vmem:[%s1716_s29 + $0x28] sm:$0xff] }
  0x13   : > { %1372 = vmatprep.mubr.msk.f32.mxu0 %vm235_vm0, %v203_v8  ;;  %1393 = vmatprep.mubr.msk.f32.mxu1 %vm235_vm0, %v217_v13  ;;  %v207_v20 = vld [vmem:[%s1716_s29 + $0x30] sm:$0xff]  ;;  %v220_v21 = vld [vmem:[%s1716_s29 + $0x98] sm:$0xff]  ;;  %v221_v22 = vld [vmem:[%s1716_s29 + $0xa0] sm:$0xff] }
  0x14   : > { %1394 = vmatmul.mubr.msk.f32.vlgmr.msra.gmra.mrb[0].mxu1 %vm235_vm0, %v218_v14  ;;  %v208_v26 = vld [vmem:[%s1716_s29 + $0x38] sm:$0xff]  ;;  %v209_v27 = vld [vmem:[%s1716_s29 + $0x40] sm:$0xff]  ;;  %v222_v28 = vld [vmem:[%s1716_s29 + $0xa8] sm:$0xff]  ;;  %1616 = vmatpush3.bf16.msra.mxu0 %v1613_v62 }
  0x15   : > { %1396 = vmatprep.mubr.msk.f32.mxu1 %vm235_vm0, %v219_v16  ;;  %1584 = vmatpush3.bf16.msra.mxu1 %v1581_v5  ;;  %v223_v29 = vld [vmem:[%s1716_s29 + $0xb0] sm:$0xff]  ;;  %v210_v33 = vld [vmem:[%s1716_s29 + $0x48] sm:$0xff]  ;;  %v224_v35 = vld [vmem:[%s1716_s29 + $0xb8] sm:$0xff] }
  0x16   : > { %1373 = vmatmul.mubr.msk.f32.gmra.mrb[2].mxu0 %vm235_vm0, %v204_v11  ;;  %1586 = vmatprep.subr.bf16.mxu1 %v1585_v15  ;;  %v211_v34 = vld [vmem:[%s1716_s29 + $0x50] sm:$0xff]  ;;  %v225_v36 = vld [vmem:[%s1716_s29 + $0xc0] sm:$0xff]  ;;  %v212_v40 = vld [vmem:[%s1716_s29 + $0x58] sm:$0xff] }
  0x17   : > { %1375 = vmatprep.mubr.msk.f32.mxu0 %vm235_vm0, %v205_v12  ;;  %v213_v41 = vld [vmem:[%s1716_s29 + $0x60] sm:$0xff]  ;;  %v226_v42 = vld [vmem:[%s1716_s29 + $0xc8] sm:$0xff]  ;;  %v227_v43 = vld [vmem:[%s1716_s29 + $0xd0] sm:$0xff]  ;;  %1618 = vmatprep.subr.bf16.mxu0 %v1617_v0 }
  0x18   : > { %1397 = vmatmul.mubr.msk.f32.gmra.mrb[2].mxu1 %vm235_vm0, %v220_v21  ;;  %v214_v47 = vld [vmem:[%s1716_s29 + $0x68] sm:$0xff]  ;;  %v215_v48 = vld [vmem:[%s1716_s29 + $0x70] sm:$0xff]  ;;  %v228_v49 = vld [vmem:[%s1716_s29 + $0xd8] sm:$0xff]  ;;  %1620 = vmatpush3.bf16.msra.mxu0 %v1617_v0 }
  0x19   : > { %1399 = vmatprep.mubr.msk.f32.mxu1 %vm235_vm0, %v221_v22  ;;  %1588 = vmatpush3.bf16.msra.mxu1 %v1585_v15  ;;  %v229_v50 = vld [vmem:[%s1716_s29 + $0xe0] sm:$0xff]  ;;  %v216_v52 = vld [vmem:[%s1716_s29 + $0x78] sm:$0xff]  ;;  %v230_v53 = vld [vmem:[%s1716_s29 + $0xe8] sm:$0xff] }
  0x1a   : > { %1376 = vmatmul.mubr.msk.f32.gmra.mrb[4].mxu0 %vm235_vm0, %v206_v19  ;;  %1590 = vmatprep.subr.bf16.mxu1 %v1589_v23  ;;  %v231_v54 = vld [vmem:[%s1716_s29 + $0xf0] sm:$0xff]  ;;  %v232_v55 = vld [vmem:[%s1716_s29 + $0xf8] sm:$0xff]  ;;  %v870_v7 = vld [vmem:[%s1949_s3 + $0x40] sm:$0xff] }
  0x1b   : > { %1378 = vmatprep.mubr.msk.f32.mxu0 %vm235_vm0, %v207_v20  ;;  %v869_v5 = vld [vmem:[%s1949_s3 + $0x38] sm:$0xff]  ;;  %1622 = vmatprep.subr.bf16.mxu0 %v1621_v3  ;;  %v871_v8 = vld [vmem:[%s1949_s3 + $0x48] sm:$0xff]  ;;  %v874_v13 = vld [vmem:[%s1949_s3 + $0x60] sm:$0xff] }
  0x1c   : > { %1400 = vmatmul.mubr.msk.f32.gmra.mrb[4].mxu1 %vm235_vm0, %v222_v28  ;;  %v1625_v6 = vpack.c.bf16 %v869_v5, %v868_v4  ;;  %1624 = vmatpush3.bf16.msra.mxu0 %v1621_v3  ;;  %v1629_v9 = vpack.c.bf16 %v871_v8, %v870_v7  ;;  %v873_v11 = vld [vmem:[%s1949_s3 + $0x58] sm:$0xff]  ;;  %v875_v14 = vld [vmem:[%s1949_s3 + $0x68] sm:$0xff] }
  0x1d   : > { %1402 = vmatprep.mubr.msk.f32.mxu1 %vm235_vm0, %v223_v29  ;;  %1592 = vmatpush3.bf16.msra.mxu1 %v1589_v23  ;;  %v1633_v12 = vpack.c.bf16 %v873_v11, %v872_v10  ;;  %v1637_v15 = vpack.c.bf16 %v875_v14, %v874_v13 }
  0x1e   : > { %1379 = vmatmul.mubr.msk.f32.gmra.mrb[6].mxu0 %vm235_vm0, %v208_v26  ;;  %1594 = vmatprep.subr.bf16.mxu1 %v1593_v30 }
  0x1f   : > { %1381 = vmatprep.mubr.msk.f32.mxu0 %vm235_vm0, %v209_v27  ;;  %1626 = vmatprep.subr.bf16.mxu0 %v1625_v6 }
  0x20   : > { %1403 = vmatmul.mubr.msk.f32.gmra.mrb[6].mxu1 %vm235_vm0, %v224_v35  ;;  %1628 = vmatpush3.bf16.msra.mxu0 %v1625_v6 }
  0x21   : > { %1405 = vmatprep.mubr.msk.f32.mxu1 %vm235_vm0, %v225_v36  ;;  %1596 = vmatpush3.bf16.msra.mxu1 %v1593_v30 }
  0x22   : > { %1382 = vmatmul.mubr.msk.f32.gmra.mrb[8].mxu0 %vm235_vm0, %v210_v33  ;;  %1598 = vmatprep.subr.bf16.mxu1 %v1597_v37 }
  0x23   : > { %1384 = vmatprep.mubr.msk.f32.mxu0 %vm235_vm0, %v211_v34  ;;  %1630 = vmatprep.subr.bf16.mxu0 %v1629_v9 }
  0x24   : > { %1406 = vmatmul.mubr.msk.f32.gmra.mrb[8].mxu1 %vm235_vm0, %v226_v42  ;;  %1632 = vmatpush3.bf16.msra.mxu0 %v1629_v9 }
  0x25   : > { %1408 = vmatprep.mubr.msk.f32.mxu1 %vm235_vm0, %v227_v43  ;;  %1600 = vmatpush3.bf16.msra.mxu1 %v1597_v37 }
  0x26   : > { %1385 = vmatmul.mubr.msk.f32.gmra.mrb[10].mxu0 %vm235_vm0, %v212_v40  ;;  %1602 = vmatprep.subr.bf16.mxu1 %v1601_v44 }
  0x27   : > { %1387 = vmatprep.mubr.msk.f32.mxu0 %vm235_vm0, %v213_v41  ;;  %1634 = vmatprep.subr.bf16.mxu0 %v1633_v12 }
  0x28   : > { %1409 = vmatmul.mubr.msk.f32.gmra.mrb[10].mxu1 %vm235_vm0, %v228_v49  ;;  %1636 = vmatpush3.bf16.msra.mxu0 %v1633_v12 }
  0x29   : > { %1411 = vmatprep.mubr.msk.f32.mxu1 %vm235_vm0, %v229_v50  ;;  %1604 = vmatpush3.bf16.msra.mxu1 %v1601_v44 }
  0x2a   : > { %1388 = vmatmul.mubr.msk.f32.gmra.mrb[12].mxu0 %vm235_vm0, %v214_v47  ;;  %1606 = vmatprep.subr.bf16.mxu1 %v1605_v51 }
  0x2b   : > { %1390 = vmatprep.mubr.msk.f32.mxu0 %vm235_vm0, %v215_v48  ;;  %1638 = vmatprep.subr.bf16.mxu0 %v1637_v15 }
  0x2c   : > { %1412 = vmatmul.mubr.msk.f32.gmra.mrb[12].mxu1 %vm235_vm0, %v230_v53  ;;  %1640 = vmatpush3.bf16.msra.mxu0 %v1637_v15 }
  0x2d   : > { %1414 = vmatprep.mubr.msk.f32.mxu1 %vm235_vm0, %v231_v54  ;;  %1608 = vmatpush3.bf16.msra.mxu1 %v1605_v51 }
  0x2e   : > { %1391 = vmatmul.mubr.msk.f32.gmra.mrb[14].mxu0 %vm235_vm0, %v216_v52  ;;  %1610 = vmatprep.subr.bf16.mxu1 %v1609_v58 }
  0x30   : > { %1415 = vmatmul.mubr.msk.f32.gmra.mrb[14].mxu1 %vm235_vm0, %v232_v55 }
  0x31   : > { %1612 = vmatpush3.bf16.msra.mxu1 %v1609_v58 }
  0xe5   : > { %v1371_v16 = vpop.f32.mrb[0].mxu0 }
  0xe6   : > { %v398_v17 = vpop.f32.mrb[1].mxu0  ;;  %v558_v19 = vmax.f32 %v1371_v16, 0.0  ;;  %v876_v16 = vld [vmem:[%s1949_s3 + $0x70] sm:$0xff] }
  0xe7   : > { %v557_v18 = vmax.f32 %v398_v17, 0.0  ;;  %v1395_v22 = vpop.f32.mrb[0].mxu1  ;;  %v877_v17 = vld [vmem:[%s1949_s3 + $0x78] sm:$0xff] }
  0xe8   : > { %v478_v24 = vpop.f32.mrb[1].mxu1  ;;  %v574_v2 = vmax.f32 %v1395_v22, 0.0 }
  0xe9   : > { %v1374_v20 = vpop.f32.mrb[2].mxu0  ;;  %1449 = vmatprep.mubr.f32.mxu1 %v557_v18  ;;  %v573_v60 = vmax.f32 %v478_v24, 0.0  ;;  %v1641_v18 = vpack.c.bf16 %v877_v17, %v876_v16 }
  0xea   : > { %v408_v21 = vpop.f32.mrb[3].mxu0  ;;  %1450 = vmatmul.mubr.f32.vlgmr.msra.gmra.mrb[16].mxu1 %v558_v19  ;;  %v560_v25 = vmax.f32 %v1374_v20, 0.0 }
  0xeb   : > { %v559_v23 = vmax.f32 %v408_v21, 0.0  ;;  %v1398_v28 = vpop.f32.mrb[2].mxu1  ;;  %1642 = vmatprep.subr.bf16.mxu0 %v1641_v18 }
  0xec   : > { %v488_v30 = vpop.f32.mrb[3].mxu1  ;;  %v576_v4 = vmax.f32 %v1398_v28, 0.0  ;;  %1644 = vmatpush3.bf16.msra.mxu0 %v1641_v18 }
  0xed   : > { %v1377_v26 = vpop.f32.mrb[4].mxu0  ;;  %1452 = vmatprep.mubr.f32.mxu1 %v559_v23  ;;  %v575_v0 = vmax.f32 %v488_v30, 0.0 }
  0xee   : > { %v418_v27 = vpop.f32.mrb[5].mxu0  ;;  %1453 = vmatmul.mubr.f32.gmra.mrb[18].mxu1 %v560_v25  ;;  %v562_v31 = vmax.f32 %v1377_v26, 0.0 }
  0xef   : > { %v561_v29 = vmax.f32 %v418_v27, 0.0  ;;  %v1401_v34 = vpop.f32.mrb[4].mxu1 }
  0xf0   : > { %v498_v36 = vpop.f32.mrb[5].mxu1  ;;  %v578_v6 = vmax.f32 %v1401_v34, 0.0 }
  0xf1   : > { %v1380_v32 = vpop.f32.mrb[6].mxu0  ;;  %1455 = vmatprep.mubr.f32.mxu1 %v561_v29  ;;  %v577_v3 = vmax.f32 %v498_v36, 0.0 }
  0xf2   : > { %v428_v33 = vpop.f32.mrb[7].mxu0  ;;  %1456 = vmatmul.mubr.f32.gmra.mrb[20].mxu1 %v562_v31  ;;  %v564_v37 = vmax.f32 %v1380_v32, 0.0 }
  0xf3   : > { %v563_v35 = vmax.f32 %v428_v33, 0.0  ;;  %v1404_v40 = vpop.f32.mrb[6].mxu1 }
  0xf4   : > { %v508_v42 = vpop.f32.mrb[7].mxu1  ;;  %v580_v8 = vmax.f32 %v1404_v40, 0.0 }
  0xf5   : > { %v1383_v38 = vpop.f32.mrb[8].mxu0  ;;  %1458 = vmatprep.mubr.f32.mxu1 %v563_v35  ;;  %v579_v5 = vmax.f32 %v508_v42, 0.0 }
  0xf6   : > { %v438_v39 = vpop.f32.mrb[9].mxu0  ;;  %1459 = vmatmul.mubr.f32.gmra.mrb[22].mxu1 %v564_v37  ;;  %v566_v43 = vmax.f32 %v1383_v38, 0.0 }
  0xf7   : > { %v565_v41 = vmax.f32 %v438_v39, 0.0  ;;  %v1407_v46 = vpop.f32.mrb[8].mxu1 }
  0xf8   : > { %v518_v48 = vpop.f32.mrb[9].mxu1  ;;  %v582_v10 = vmax.f32 %v1407_v46, 0.0 }
  0xf9   : > { %v1386_v44 = vpop.f32.mrb[10].mxu0  ;;  %1461 = vmatprep.mubr.f32.mxu1 %v565_v41  ;;  %v581_v7 = vmax.f32 %v518_v48, 0.0 }
  0xfa   : > { %v448_v45 = vpop.f32.mrb[11].mxu0  ;;  %1462 = vmatmul.mubr.f32.gmra.mrb[24].mxu1 %v566_v43  ;;  %v568_v49 = vmax.f32 %v1386_v44, 0.0 }
  0xfb   : > { %v567_v47 = vmax.f32 %v448_v45, 0.0  ;;  %v1410_v52 = vpop.f32.mrb[10].mxu1 }
  0xfc   : > { %v528_v54 = vpop.f32.mrb[11].mxu1  ;;  %v584_v12 = vmax.f32 %v1410_v52, 0.0 }
  0xfd   : > { %v1389_v50 = vpop.f32.mrb[12].mxu0  ;;  %1464 = vmatprep.mubr.f32.mxu1 %v567_v47  ;;  %v583_v9 = vmax.f32 %v528_v54, 0.0 }
  0xfe   : > { %v458_v51 = vpop.f32.mrb[13].mxu0  ;;  %1465 = vmatmul.mubr.f32.gmra.mrb[26].mxu1 %v568_v49  ;;  %v570_v55 = vmax.f32 %v1389_v50, 0.0 }
  0xff   : > { %v569_v53 = vmax.f32 %v458_v51, 0.0  ;;  %v1413_v58 = vpop.f32.mrb[12].mxu1 }
 0x100   : > { %v538_v61 = vpop.f32.mrb[13].mxu1  ;;  %v586_v14 = vmax.f32 %v1413_v58, 0.0 }
 0x101   : > { %v1392_v56 = vpop.f32.mrb[14].mxu0  ;;  %1467 = vmatprep.mubr.f32.mxu1 %v569_v53  ;;  %v585_v11 = vmax.f32 %v538_v61, 0.0 }
 0x102   : > { %v468_v57 = vpop.f32.mrb[15].mxu0  ;;  %1468 = vmatmul.mubr.f32.gmra.mrb[28].mxu1 %v570_v55  ;;  %v572_v62 = vmax.f32 %v1392_v56, 0.0 }
 0x103   : > { %v571_v59 = vmax.f32 %v468_v57, 0.0  ;;  %v1416_v63 = vpop.f32.mrb[14].mxu1 }
 0x104   : > { %v548_v1 = vpop.f32.mrb[15].mxu1  ;;  %v588_v15 = vmax.f32 %v1416_v63, 0.0 }
 0x105   : > { %1470 = vmatprep.mubr.f32.mxu1 %v571_v59  ;;  %v587_v13 = vmax.f32 %v548_v1, 0.0 }
 0x106   : > { %1471 = vmatmul.mubr.f32.gmra.mrb[30].mxu1 %v572_v62 }
 0x107   : > { %1473 = vmatprep.mubr.f32.mxu1 %v573_v60 }
 0x10a   : > { %1474 = vmatmul.mubr.f32.gmra.mrb[32].mxu1 %v574_v2 }
 0x10b   : > { %1476 = vmatprep.mubr.f32.mxu1 %v575_v0 }
 0x10e   : > { %1477 = vmatmul.mubr.f32.gmra.mrb[34].mxu1 %v576_v4 }
 0x10f   : > { %1479 = vmatprep.mubr.f32.mxu1 %v577_v3 }
 0x112   : > { %1480 = vmatmul.mubr.f32.gmra.mrb[36].mxu1 %v578_v6 }
 0x113   : > { %1482 = vmatprep.mubr.f32.mxu1 %v579_v5 }
 0x116   : > { %1483 = vmatmul.mubr.f32.gmra.mrb[38].mxu1 %v580_v8 }
 0x117   : > { %1485 = vmatprep.mubr.f32.mxu1 %v581_v7 }
 0x11a   : > { %1486 = vmatmul.mubr.f32.gmra.mrb[40].mxu1 %v582_v10 }
 0x11b   : > { %1488 = vmatprep.mubr.f32.mxu1 %v583_v9 }
 0x11e   : > { %1489 = vmatmul.mubr.f32.gmra.mrb[42].mxu1 %v584_v12 }
 0x11f   : > { %1491 = vmatprep.mubr.f32.mxu1 %v585_v11 }
 0x122   : > { %1492 = vmatmul.mubr.f32.gmra.mrb[44].mxu1 %v586_v14 }
 0x123   : > { %1494 = vmatprep.mubr.f32.mxu1 %v587_v13 }
 0x126   : > { %1495 = vmatmul.mubr.f32.gmra.mrb[46].mxu1 %v588_v15 }
 0x1bd   : > { %v1451_v19 = vpop.f32.mrb[16].mxu1 }
 0x1be   : > { %v671_v20 = vpop.f32.mrb[17].mxu1  ;;  %v831_v22 = vmax.f32 %v1451_v19, 0.0 }
 0x1bf   : > { %v830_v21 = vmax.f32 %v671_v20, 0.0 }
 0x1c1   : > { %v1454_v23 = vpop.f32.mrb[18].mxu1  ;;  %1529 = vmatprep.mubr.f32.mxu0 %v830_v21 }
 0x1c2   : > { %v681_v24 = vpop.f32.mrb[19].mxu1  ;;  %1530 = vmatmul.mubr.f32.vlgmr.msra.gmra.mrb[16].mxu0 %v831_v22  ;;  %v833_v26 = vmax.f32 %v1454_v23, 0.0 }
 0x1c3   : > { %v832_v25 = vmax.f32 %v681_v24, 0.0 }
 0x1c5   : > { %v1457_v27 = vpop.f32.mrb[20].mxu1  ;;  %1532 = vmatprep.mubr.f32.mxu0 %v832_v25 }
 0x1c6   : > { %v691_v28 = vpop.f32.mrb[21].mxu1  ;;  %1533 = vmatmul.mubr.f32.gmra.mrb[18].mxu0 %v833_v26  ;;  %v835_v30 = vmax.f32 %v1457_v27, 0.0 }
 0x1c7   : > { %v834_v29 = vmax.f32 %v691_v28, 0.0 }
 0x1c9   : > { %v1460_v31 = vpop.f32.mrb[22].mxu1  ;;  %1535 = vmatprep.mubr.f32.mxu0 %v834_v29 }
 0x1ca   : > { %v701_v32 = vpop.f32.mrb[23].mxu1  ;;  %1536 = vmatmul.mubr.f32.gmra.mrb[20].mxu0 %v835_v30  ;;  %v837_v34 = vmax.f32 %v1460_v31, 0.0 }
 0x1cb   : > { %v836_v33 = vmax.f32 %v701_v32, 0.0 }
 0x1cd   : > { %v1463_v35 = vpop.f32.mrb[24].mxu1  ;;  %1538 = vmatprep.mubr.f32.mxu0 %v836_v33 }
 0x1ce   : > { %v711_v36 = vpop.f32.mrb[25].mxu1  ;;  %1539 = vmatmul.mubr.f32.gmra.mrb[22].mxu0 %v837_v34  ;;  %v839_v38 = vmax.f32 %v1463_v35, 0.0 }
 0x1cf   : > { %v838_v37 = vmax.f32 %v711_v36, 0.0 }
 0x1d1   : > { %v1466_v39 = vpop.f32.mrb[26].mxu1  ;;  %1541 = vmatprep.mubr.f32.mxu0 %v838_v37 }
 0x1d2   : > { %v721_v40 = vpop.f32.mrb[27].mxu1  ;;  %1542 = vmatmul.mubr.f32.gmra.mrb[24].mxu0 %v839_v38  ;;  %v841_v42 = vmax.f32 %v1466_v39, 0.0 }
 0x1d3   : > { %v840_v41 = vmax.f32 %v721_v40, 0.0 }
 0x1d5   : > { %v1469_v43 = vpop.f32.mrb[28].mxu1  ;;  %1544 = vmatprep.mubr.f32.mxu0 %v840_v41 }
 0x1d6   : > { %v731_v44 = vpop.f32.mrb[29].mxu1  ;;  %1545 = vmatmul.mubr.f32.gmra.mrb[26].mxu0 %v841_v42  ;;  %v843_v46 = vmax.f32 %v1469_v43, 0.0 }
 0x1d7   : > { %v842_v45 = vmax.f32 %v731_v44, 0.0 }
 0x1d9   : > { %v1472_v47 = vpop.f32.mrb[30].mxu1  ;;  %1547 = vmatprep.mubr.f32.mxu0 %v842_v45 }
 0x1da   : > { %v741_v48 = vpop.f32.mrb[31].mxu1  ;;  %1548 = vmatmul.mubr.f32.gmra.mrb[28].mxu0 %v843_v46  ;;  %v845_v50 = vmax.f32 %v1472_v47, 0.0 }
 0x1db   : > { %v844_v49 = vmax.f32 %v741_v48, 0.0 }
 0x1dd   : > { %v1475_v51 = vpop.f32.mrb[32].mxu1  ;;  %1550 = vmatprep.mubr.f32.mxu0 %v844_v49 }
 0x1de   : > { %v751_v52 = vpop.f32.mrb[33].mxu1  ;;  %1551 = vmatmul.mubr.f32.gmra.mrb[30].mxu0 %v845_v50  ;;  %v847_v54 = vmax.f32 %v1475_v51, 0.0 }
 0x1df   : > { %v846_v53 = vmax.f32 %v751_v52, 0.0 }
 0x1e1   : > { %v1478_v55 = vpop.f32.mrb[34].mxu1  ;;  %1553 = vmatprep.mubr.f32.mxu0 %v846_v53 }
 0x1e2   : > { %v761_v56 = vpop.f32.mrb[35].mxu1  ;;  %1554 = vmatmul.mubr.f32.gmra.mrb[32].mxu0 %v847_v54  ;;  %v849_v58 = vmax.f32 %v1478_v55, 0.0 }
 0x1e3   : > { %v848_v57 = vmax.f32 %v761_v56, 0.0 }
 0x1e5   : > { %v1481_v59 = vpop.f32.mrb[36].mxu1  ;;  %1556 = vmatprep.mubr.f32.mxu0 %v848_v57 }
 0x1e6   : > { %v771_v60 = vpop.f32.mrb[37].mxu1  ;;  %1557 = vmatmul.mubr.f32.gmra.mrb[34].mxu0 %v849_v58  ;;  %v851_v62 = vmax.f32 %v1481_v59, 0.0 }
 0x1e7   : > { %v850_v61 = vmax.f32 %v771_v60, 0.0 }
 0x1e9   : > { %v1484_v63 = vpop.f32.mrb[38].mxu1  ;;  %1559 = vmatprep.mubr.f32.mxu0 %v850_v61 }
 0x1ea   : > { %v781_v0 = vpop.f32.mrb[39].mxu1  ;;  %1560 = vmatmul.mubr.f32.gmra.mrb[36].mxu0 %v851_v62  ;;  %v853_v2 = vmax.f32 %v1484_v63, 0.0 }
 0x1eb   : > { %v852_v1 = vmax.f32 %v781_v0, 0.0 }
 0x1ed   : > { %v1487_v3 = vpop.f32.mrb[40].mxu1  ;;  %1562 = vmatprep.mubr.f32.mxu0 %v852_v1 }
 0x1ee   : > { %v791_v4 = vpop.f32.mrb[41].mxu1  ;;  %1563 = vmatmul.mubr.f32.gmra.mrb[38].mxu0 %v853_v2  ;;  %v855_v6 = vmax.f32 %v1487_v3, 0.0 }
 0x1ef   : > { %v854_v5 = vmax.f32 %v791_v4, 0.0 }
 0x1f1   : > { %v1490_v7 = vpop.f32.mrb[42].mxu1  ;;  %1565 = vmatprep.mubr.f32.mxu0 %v854_v5 }
 0x1f2   : > { %v801_v8 = vpop.f32.mrb[43].mxu1  ;;  %1566 = vmatmul.mubr.f32.gmra.mrb[40].mxu0 %v855_v6  ;;  %v857_v10 = vmax.f32 %v1490_v7, 0.0 }
 0x1f3   : > { %v856_v9 = vmax.f32 %v801_v8, 0.0 }
 0x1f5   : > { %v1493_v11 = vpop.f32.mrb[44].mxu1  ;;  %1568 = vmatprep.mubr.f32.mxu0 %v856_v9 }
 0x1f6   : > { %v811_v12 = vpop.f32.mrb[45].mxu1  ;;  %1569 = vmatmul.mubr.f32.gmra.mrb[42].mxu0 %v857_v10  ;;  %v859_v14 = vmax.f32 %v1493_v11, 0.0 }
 0x1f7   : > { %v858_v13 = vmax.f32 %v811_v12, 0.0 }
 0x1f9   : > { %v1496_v15 = vpop.f32.mrb[46].mxu1  ;;  %1571 = vmatprep.mubr.f32.mxu0 %v858_v13 }
 0x1fa   : > { %v821_v16 = vpop.f32.mrb[47].mxu1  ;;  %1572 = vmatmul.mubr.f32.gmra.mrb[44].mxu0 %v859_v14  ;;  %v861_v18 = vmax.f32 %v1496_v15, 0.0 }
 0x1fb   : > { %v860_v17 = vmax.f32 %v821_v16, 0.0 }
 0x1fd   : > { %1574 = vmatprep.mubr.f32.mxu0 %v860_v17 }
 0x1fe   : > { %1575 = vmatmul.mubr.f32.gmra.mrb[46].mxu0 %v861_v18 }
 0x295   : > { %v1531_v19 = vpop.f32.mrb[16].mxu0 }
 0x296   : > { %1105 = vst.msk [vmem:[%s1877_s22 + $0x8] sm:$0xff] %vm1103_vm1, %v1531_v19  ;;  %v944_v20 = vpop.f32.mrb[17].mxu0 }
 0x297   : > { %1104 = vst.msk [vmem:[%s1877_s22] sm:$0xff] %vm1103_vm1, %v944_v20 }
 0x299   : > { %v1534_v21 = vpop.f32.mrb[18].mxu0 }
 0x29a   : > { %1107 = vst.msk [vmem:[%s1877_s22 + $0x18] sm:$0xff] %vm1103_vm1, %v1534_v21  ;;  %v954_v22 = vpop.f32.mrb[19].mxu0 }
 0x29b   : > { %1106 = vst.msk [vmem:[%s1877_s22 + $0x10] sm:$0xff] %vm1103_vm1, %v954_v22 }
 0x29d   : > { %v1537_v23 = vpop.f32.mrb[20].mxu0 }
 0x29e   : > { %1109 = vst.msk [vmem:[%s1877_s22 + $0x28] sm:$0xff] %vm1103_vm1, %v1537_v23  ;;  %v964_v24 = vpop.f32.mrb[21].mxu0 }
 0x29f   : > { %1108 = vst.msk [vmem:[%s1877_s22 + $0x20] sm:$0xff] %vm1103_vm1, %v964_v24 }
 0x2a1   : > { %v1540_v25 = vpop.f32.mrb[22].mxu0 }
 0x2a2   : > { %1111 = vst.msk [vmem:[%s1877_s22 + $0x38] sm:$0xff] %vm1103_vm1, %v1540_v25  ;;  %v974_v26 = vpop.f32.mrb[23].mxu0 }
 0x2a3   : > { %1110 = vst.msk [vmem:[%s1877_s22 + $0x30] sm:$0xff] %vm1103_vm1, %v974_v26 }
 0x2a5   : > { %v1543_v27 = vpop.f32.mrb[24].mxu0 }
 0x2a6   : > { %1113 = vst.msk [vmem:[%s1877_s22 + $0x48] sm:$0xff] %vm1103_vm1, %v1543_v27  ;;  %v984_v28 = vpop.f32.mrb[25].mxu0 }
 0x2a7   : > { %1112 = vst.msk [vmem:[%s1877_s22 + $0x40] sm:$0xff] %vm1103_vm1, %v984_v28 }
 0x2a9   : > { %v1546_v29 = vpop.f32.mrb[26].mxu0 }
 0x2aa   : > { %1115 = vst.msk [vmem:[%s1877_s22 + $0x58] sm:$0xff] %vm1103_vm1, %v1546_v29  ;;  %v994_v30 = vpop.f32.mrb[27].mxu0 }
 0x2ab   : > { %1114 = vst.msk [vmem:[%s1877_s22 + $0x50] sm:$0xff] %vm1103_vm1, %v994_v30 }
 0x2ad   : > { %v1549_v31 = vpop.f32.mrb[28].mxu0 }
 0x2ae   : > { %1117 = vst.msk [vmem:[%s1877_s22 + $0x68] sm:$0xff] %vm1103_vm1, %v1549_v31  ;;  %v1004_v32 = vpop.f32.mrb[29].mxu0 }
 0x2af   : > { %1116 = vst.msk [vmem:[%s1877_s22 + $0x60] sm:$0xff] %vm1103_vm1, %v1004_v32 }
 0x2b1   : > { %v1552_v33 = vpop.f32.mrb[30].mxu0 }
 0x2b2   : > { %1119 = vst.msk [vmem:[%s1877_s22 + $0x78] sm:$0xff] %vm1103_vm1, %v1552_v33  ;;  %v1014_v34 = vpop.f32.mrb[31].mxu0 }
 0x2b3   : > { %1118 = vst.msk [vmem:[%s1877_s22 + $0x70] sm:$0xff] %vm1103_vm1, %v1014_v34 }
 0x2b5   : > { %v1555_v35 = vpop.f32.mrb[32].mxu0 }
 0x2b6   : > { %1121 = vst.msk [vmem:[%s1877_s22 + $0x88] sm:$0xff] %vm1103_vm1, %v1555_v35  ;;  %v1024_v36 = vpop.f32.mrb[33].mxu0 }
 0x2b7   : > { %1120 = vst.msk [vmem:[%s1877_s22 + $0x80] sm:$0xff] %vm1103_vm1, %v1024_v36 }
 0x2b9   : > { %v1558_v37 = vpop.f32.mrb[34].mxu0 }
 0x2ba   : > { %1123 = vst.msk [vmem:[%s1877_s22 + $0x98] sm:$0xff] %vm1103_vm1, %v1558_v37  ;;  %v1034_v38 = vpop.f32.mrb[35].mxu0 }
 0x2bb   : > { %1122 = vst.msk [vmem:[%s1877_s22 + $0x90] sm:$0xff] %vm1103_vm1, %v1034_v38 }
 0x2bd   : > { %v1561_v39 = vpop.f32.mrb[36].mxu0 }
 0x2be   : > { %1125 = vst.msk [vmem:[%s1877_s22 + $0xa8] sm:$0xff] %vm1103_vm1, %v1561_v39  ;;  %v1044_v40 = vpop.f32.mrb[37].mxu0 }
 0x2bf   : > { %1124 = vst.msk [vmem:[%s1877_s22 + $0xa0] sm:$0xff] %vm1103_vm1, %v1044_v40 }
 0x2c1   : > { %v1564_v41 = vpop.f32.mrb[38].mxu0 }
 0x2c2   : > { %1127 = vst.msk [vmem:[%s1877_s22 + $0xb8] sm:$0xff] %vm1103_vm1, %v1564_v41  ;;  %v1054_v42 = vpop.f32.mrb[39].mxu0 }
 0x2c3   : > { %1126 = vst.msk [vmem:[%s1877_s22 + $0xb0] sm:$0xff] %vm1103_vm1, %v1054_v42 }
 0x2c5   : > { %v1567_v43 = vpop.f32.mrb[40].mxu0 }
 0x2c6   : > { %1129 = vst.msk [vmem:[%s1877_s22 + $0xc8] sm:$0xff] %vm1103_vm1, %v1567_v43  ;;  %v1064_v44 = vpop.f32.mrb[41].mxu0 }
 0x2c7   : > { %1128 = vst.msk [vmem:[%s1877_s22 + $0xc0] sm:$0xff] %vm1103_vm1, %v1064_v44 }
 0x2c9   : > { %v1570_v45 = vpop.f32.mrb[42].mxu0 }
 0x2ca   : > { %1131 = vst.msk [vmem:[%s1877_s22 + $0xd8] sm:$0xff] %vm1103_vm1, %v1570_v45  ;;  %v1074_v46 = vpop.f32.mrb[43].mxu0 }
 0x2cb   : > { %1130 = vst.msk [vmem:[%s1877_s22 + $0xd0] sm:$0xff] %vm1103_vm1, %v1074_v46 }
 0x2cd   : > { %v1573_v47 = vpop.f32.mrb[44].mxu0 }
 0x2ce   : > { %1133 = vst.msk [vmem:[%s1877_s22 + $0xe8] sm:$0xff] %vm1103_vm1, %v1573_v47  ;;  %v1084_v48 = vpop.f32.mrb[45].mxu0 }
 0x2cf   : > { %1132 = vst.msk [vmem:[%s1877_s22 + $0xe0] sm:$0xff] %vm1103_vm1, %v1084_v48 }
 0x2d1   : > { %v1576_v49 = vpop.f32.mrb[46].mxu0 }
 0x2d2   : > { %1135 = vst.msk [vmem:[%s1877_s22 + $0xf8] sm:$0xff] %vm1103_vm1, %v1576_v49  ;;  %v1094_v50 = vpop.f32.mrb[47].mxu0 }
 0x2d3   : > { %1134 = vst.msk [vmem:[%s1877_s22 + $0xf0] sm:$0xff] %vm1103_vm1, %v1094_v50 }
 0x2d4 PF: > { %s14_s15 = sadd.s32 1, %s1661_s15  }
 0x2d5   : > { %p11_p4 = scmp.ge.s32.totalorder %s14_s15, 4  }
 0x2d7   :  { %13 = sbr.rel (!%p11_p4) target bundleno = 1 (0x1), region = 66 }

</bundles_post_ra>
